<compile_context>
chip_gen: v6e
topology: v6e:2x2x1
jax: 0.10.0
libtpu: 0.0.40
codegen_flags: <defaults>
</compile_context>

<pallas_src>
import numpy as np

import jax
import jax.numpy as jnp
from jax.experimental import pallas as pl
from jax.experimental.pallas import tpu as pltpu

POOL_W = 9          # AdaptiveAvgPool2d((1, 9)) hard-coded in the module
K_SIZE = 3          # Conv1d kernel size (module default); applied 4 times: 9 -> 1
N_CONV = 4          # conv applied 4 times with shared weights


# ----------------------------- host-side folding helpers ---------------------------------

def _compose_conv(a, b):
    """Per-channel composition of two cross-correlations: a (C, La), b (C, Lb).

    Cross-correlating with kernel `a` then kernel `b` equals a single cross-correlation
    with the full linear convolution conv(a, b), length La + Lb - 1."""
    C, La = a.shape
    Lb = b.shape[1]
    out = jnp.zeros((C, La + Lb - 1), a.dtype)
    for j in range(Lb):
        out = out.at[:, j:j + La].add(a * b[:, j:j + 1])
    return out


def _adaptive_pool_matrix(W, out_w):
    """(W, out_w) matrix reproducing PyTorch adaptive average pooling windows along W."""
    P = np.zeros((W, out_w), np.float32)
    for i in range(out_w):
        s = (i * W) // out_w
        e = -(-((i + 1) * W) // out_w)          # ceil
        P[s:e, i] = 1.0 / (e - s)
    return jnp.asarray(P)


def _pick_tb(B, C, HW, bytes_cap=2 * 1024 * 1024, min_grid=2):
    """Largest batch tile that divides B, fits the VMEM budget, keeps >= min_grid steps."""
    per_b = C * HW * 4
    cap = max(1, bytes_cap // per_b)
    if B >= min_grid:
        cap = min(cap, max(1, B // min_grid))   # leave >= 2 parallel steps (v7x megacore)
    tb = 1
    for d in range(1, min(B, cap) + 1):
        if B % d == 0:
            tb = d
    return tb


# ----------------------------------- Pallas kernel ---------------------------------------

def eca_kernel(x_ref, g_ref, o_ref):
    x = x_ref[...]                                              # (TB, C, HW) f32
    g = g_ref[...]                                              # (C, HW)     f32, resident
    s = jnp.sum(x * g[None, :, :], axis=-1, keepdims=True)      # (TB, C, 1) gating logit
    scale = 1.0 / (1.0 + jnp.exp(-s))                           # sigmoid (exp -> EUP slot)
    o_ref[...] = (x * scale).astype(o_ref.dtype)


@jax.jit
def eca_forward(x, w):
    """x: (B, C, H, W) f32; w: (C, K) squeezed Conv1d weight (out, in/groups=1, K)."""
    B, C, H, W = x.shape
    HW = H * W

    # --- fold pool + 4 shared depthwise convs into one per-channel weight row (C, HW) ---
    k_eff = w
    for _ in range(N_CONV - 1):
        k_eff = _compose_conv(k_eff, w)                         # (C, 4*K - 3) == (C, 9)
    assert k_eff.shape[1] == POOL_W, "conv chain must reduce pooled width 9 to length 1"
    P = _adaptive_pool_matrix(W, POOL_W)                        # (W, 9) adaptive windows
    g = (k_eff @ P.T) / H                                       # (C, W); mean over H folded
    g_full = jnp.tile(g, (1, H))                                # (C, H*W), column = h*W + w

    x3 = x.reshape(B, C, HW)                                    # lane-dense minor dim
    tb = _pick_tb(B, C, HW)

    out = pl.pallas_call(
        eca_kernel,
        out_shape=jax.ShapeDtypeStruct((B, C, HW), x.dtype),
        grid=(B // tb,),
        in_specs=[pl.BlockSpec((tb, C, HW), lambda i: (i, 0, 0)),
                  pl.BlockSpec((C, HW), lambda i: (0, 0))],      # constant -> DMA'd once
        out_specs=pl.BlockSpec((tb, C, HW), lambda i: (i, 0, 0)),
        compiler_params=pltpu.CompilerParams(dimension_semantics=("parallel",)),
    )(x3, g_full)

    return out.reshape(B, C, H, W)


# ----------------------------- pure-JAX reference (step-by-step) -------------------------

def _dwconv1d_valid(y, w):
    """PyTorch Conv1d(groups=C, bias=False, padding=0): y (B, C, L), w (C, K)."""
    K = w.shape[1]
    Lo = y.shape[-1] - K + 1
    out = jnp.zeros(y.shape[:-1] + (Lo,), y.dtype)
    for kk in range(K):
        out = out + y[..., kk:kk + Lo] * w[:, kk][None, :, None]
    return out


def eca_reference(x, w):
    B, C, H, W = x.shape
    xm = jnp.mean(x, axis=2)                                    # mean over H -> (B, C, W)
    cols = []
    for i in range(POOL_W):                                     # adaptive avg pool to 9
        s = (i * W) // POOL_W
        e = -(-((i + 1) * W) // POOL_W)
        cols.append(jnp.mean(xm[:, :, s:e], axis=-1))
    y = jnp.stack(cols, axis=-1)                                # (B, C, 9)
    for _ in range(N_CONV):                                     # 9 -> 7 -> 5 -> 3 -> 1
        y = _dwconv1d_valid(y, w)
    scale = 1.0 / (1.0 + jnp.exp(-y))                           # (B, C, 1)
    return x * scale[..., None]


# --------------------------------------- test ---------------------------------------------

if __name__ == "__main__":
    key = jax.random.PRNGKey(0)
    kx, kw = jax.random.split(key)

    B, C, H, W = 2, 35, 16, 16          # channel=35 is the module default; 16x16 spatial
    x = jax.random.normal(kx, (B, C, H, W), jnp.float32)
    # PyTorch Conv1d weight is (C, 1, K); we keep the squeezed (C, K) view.
    w = jax.random.normal(kw, (C, K_SIZE), jnp.float32) * 0.3

    out = jax.block_until_ready(eca_forward(x, w))
    ref = jax.block_until_ready(eca_reference(x, w))

    assert out.shape == (B, C, H, W)
    assert jnp.allclose(out, ref, atol=1e-4, rtol=1e-4), "mismatch vs pure-JAX reference"
    print("KERNEL_OK")
</pallas_src>

<mosaic_0001>
module attributes {stable_mosaic.version = 11 : i64} {
  func.func @eca_kernel(%arg0: i32, %arg1: memref<1x35x256xf32, #tpu.memory_space<vmem>>, %arg2: memref<35x256xf32, #tpu.memory_space<vmem>>, %arg3: memref<1x35x256xf32, #tpu.memory_space<vmem>>) attributes {dimension_semantics = [#tpu.dimension_semantics<parallel>], iteration_bounds = array<i64: 2>, scalar_prefetch = 0 : i64, scratch_operands = 0 : i64, tpu.core_type = #tpu.core_type<tc>, window_params = [{transform_indices = @transform_0, window_bounds = array<i64: 1, 35, 256>}, {pipeline_mode = #tpu.pipeline_mode<synchronous>, transform_indices = @transform_1, window_bounds = array<i64: 35, 256>}, {transform_indices = @transform_2, window_bounds = array<i64: 1, 35, 256>}]} {
    %c0 = arith.constant 0 : index
    %c0_0 = arith.constant 0 : index
    %c0_1 = arith.constant 0 : index
    %0 = vector.load %arg1[%c0, %c0_0, %c0_1] : memref<1x35x256xf32, #tpu.memory_space<vmem>>, vector<1x35x256xf32>
    %c0_2 = arith.constant 0 : index
    %c0_3 = arith.constant 0 : index
    %1 = vector.load %arg2[%c0_2, %c0_3] : memref<35x256xf32, #tpu.memory_space<vmem>>, vector<35x256xf32>
    %2 = vector.shape_cast %1 : vector<35x256xf32> to vector<1x35x256xf32>
    %3 = arith.mulf %0, %2 : vector<1x35x256xf32>
    %cst = arith.constant dense<0.000000e+00> : vector<1x35xf32>
    %4 = vector.multi_reduction <add>, %3, %cst [2] : vector<1x35x256xf32> to vector<1x35xf32>
    %5 = vector.shape_cast %4 : vector<1x35xf32> to vector<1x35x1xf32>
    %cst_4 = arith.constant 0.000000e+00 : f32
    %6 = vector.broadcast %cst_4 : f32 to vector<1x35x1xf32>
    %7 = arith.subf %6, %5 : vector<1x35x1xf32>
    %8 = math.exp %7 : vector<1x35x1xf32>
    %cst_5 = arith.constant 1.000000e+00 : f32
    %9 = vector.broadcast %cst_5 : f32 to vector<1x35x1xf32>
    %10 = arith.addf %9, %8 : vector<1x35x1xf32>
    %cst_6 = arith.constant 1.000000e+00 : f32
    %11 = vector.broadcast %cst_6 : f32 to vector<1x35x1xf32>
    %12 = arith.divf %11, %10 : vector<1x35x1xf32>
    %13 = vector.broadcast %12 : vector<1x35x1xf32> to vector<1x35x256xf32>
    %14 = arith.mulf %0, %13 : vector<1x35x256xf32>
    %c0_7 = arith.constant 0 : index
    %c0_8 = arith.constant 0 : index
    %c0_9 = arith.constant 0 : index
    %15 = vector.load %arg3[%c0_7, %c0_8, %c0_9] : memref<1x35x256xf32, #tpu.memory_space<vmem>>, vector<1x35x256xf32>
    tpu.vector_store %arg3[%c0_7, %c0_8, %c0_9], %14 {strides = array<i32>} : memref<1x35x256xf32, #tpu.memory_space<vmem>>, vector<1x35x256xf32>,
    return
  }
  func.func @transform_0(%arg0: i32) -> (i32, i32, i32) {
    %c0_i32 = arith.constant 0 : i32
    %c0_i32_0 = arith.constant 0 : i32
    %c0_i32_1 = arith.constant 0 : i32
    return %arg0, %c0_i32, %c0_i32_0 : i32, i32, i32
  }
  func.func @transform_1(%arg0: i32) -> (i32, i32) {
    %c0_i32 = arith.constant 0 : i32
    %c0_i32_0 = arith.constant 0 : i32
    %c0_i32_1 = arith.constant 0 : i32
    return %c0_i32, %c0_i32_0 : i32, i32
  }
  func.func @transform_2(%arg0: i32) -> (i32, i32, i32) {
    %c0_i32 = arith.constant 0 : i32
    %c0_i32_0 = arith.constant 0 : i32
    %c0_i32_1 = arith.constant 0 : i32
    return %arg0, %c0_i32, %c0_i32_0 : i32, i32, i32
  }
}

</mosaic_0001>

<bundles_post_ra>
// kernel: eca_forward.1
= control target key start
LH: loop header
LB: loop body
LE: loop exit
PB: predicated region body
PF: predicated region fallthrough
CT: control target
= control target key end

     0   :  { %s358_s9 = smov 0   ;;  %s452_s0 = inlined_call_operand.vmem [shape: f32[2,35,256], index: 0, kind: input, shape index: {}]   ;;  %s453_s1 = inlined_call_operand.vmem [shape: f32[35,256], index: 1, kind: input, shape index: {}]   ;;  %s454_s2 = inlined_call_operand.vmem [shape: f32[2,35,256], index: 2, kind: output, shape index: {}]  }
   0x1 LB: > { %s297_s10 = sadd.s32 4294967295, %s341_s9   ;;  %p301_p0 = scmp.ge.s32.totalorder %s341_s9, 1  ;;  %s341_s9 = sphi %s358_s9, %s12_s9  }
   0x2   : > { %p112_p1 = scmp.lt.s32.totalorder %s341_s9, 3 }
   0x4   : > { %p113_p2 = pnand %p301_p0, %p112_p1 }
   0x5   : > { %p134_p3 = scmp.lt.s32.totalorder (!%p113_p2), %s297_s10, 1 }
   0x6   : > { %116 = sbr.rel (%p113_p2) target bundleno = 203 (0xcb), region = 28 }
   0xb   : > { %s456_s10 = smov (!%p134_p3, %s297_s10), 1  ;;  %v154_v0 = vld [vmem:[%s453_s1] sm:$0xff]  ;;  %v155_v1 = vld [vmem:[%s453_s1 + $0x8] sm:$0xff]  ;;  %v156_v4 = vld [vmem:[%s453_s1 + $0x10] sm:$0xff]  ;;  %vm186_vm0 = vcmask 1042432  }
   0xc   : > { %s306_s13 = smul.u32 80, %s456_s10  ;;  %v158_v2 = vld [vmem:[%s453_s1 + $0x20] sm:$0xff]  ;;  %v159_v3 = vld [vmem:[%s453_s1 + $0x28] sm:$0xff]  ;;  %v157_v5 = vld [vmem:[%s453_s1 + $0x18] sm:$0xff] }
   0xd   : > { %v160_v6 = vld [vmem:[%s453_s1 + $0x30] sm:$0xff]  ;;  %v161_v7 = vld [vmem:[%s453_s1 + $0x38] sm:$0xff]  ;;  %v162_v8 = vld [vmem:[%s453_s1 + $0x40] sm:$0x7] }
   0xe   : > { %s138_s28 = scalar_lea.vmem %s452_s0, %s306_s13  ;;  %v163_v9 = vld [vmem:[%s453_s1 + $0x48] sm:$0x7]  ;;  %s143_s11 = scalar_lea.vmem %s454_s2, %s306_s13 }
   0xf   : > { %v404_v10 = vld [vmem:[%s138_s28] sm:$0xff]  ;;  %v406_v11 = vld [vmem:[%s138_s28 + $0x8] sm:$0xff]  ;;  %v415_v17 = vld [vmem:[%s138_s28 + $0x10] sm:$0xff] }
  0x10   : > { %v408_v12 = vld [vmem:[%s138_s28 + $0x20] sm:$0xff]  ;;  %v164_v13 = vmul.f32 %v154_v0, %v404_v10  ;;  %v165_v14 = vmul.f32 %v155_v1, %v406_v11  ;;  %v412_v15 = vld [vmem:[%s138_s28 + $0x28] sm:$0xff]  ;;  %v417_v18 = vld [vmem:[%s138_s28 + $0x18] sm:$0xff]  ;;  %v166_v20 = vmul.f32 %v156_v4, %v415_v17 }
  0x11   : > { %v168_v16 = vmul.f32 %v158_v2, %v408_v12  ;;  %v169_v19 = vmul.f32 %v159_v3, %v412_v15  ;;  %v167_v21 = vmul.f32 %v157_v5, %v417_v18  ;;  %v422_v22 = vld [vmem:[%s138_s28 + $0x30] sm:$0xff]  ;;  %v424_v23 = vld [vmem:[%s138_s28 + $0x38] sm:$0xff]  ;;  %v426_v24 = vld [vmem:[%s138_s28 + $0x40] sm:$0x7] }
  0x12   : > { %v174_v25 = vadd.f32 %v165_v14, %v164_v13  ;;  %v170_v26 = vmul.f32 %v160_v6, %v422_v22  ;;  %v171_v27 = vmul.f32 %v161_v7, %v424_v23  ;;  %v430_v28 = vld [vmem:[%s138_s28 + $0x48] sm:$0x7]  ;;  %v172_v29 = vmul.f32 %v162_v8, %v426_v24 }
  0x13   : > { %v180_v30 = vadd.f32 %v169_v19, %v168_v16  ;;  %v173_v31 = vmul.f32 %v163_v9, %v430_v28  ;;  %v177_v32 = vadd.f32 %v167_v21, %v166_v20 }
  0x14   : > { %175 = vadd.xlane.f32.xlu0 %v174_v25  ;;  %v183_v33 = vadd.f32 %v171_v27, %v170_v26  ;;  %v187_v34 = vsel %vm186_vm0, %v172_v29, 0.0 }
  0x15   : > { %181 = vadd.xlane.f32.xlu1 %v180_v30  ;;  %v188_v35 = vsel %vm186_vm0, %v173_v31, 0.0 }
  0x16   : > { %v189_v36 = vadd.f32 %v188_v35, %v187_v34 }
  0x18   : > { %178 = vadd.xlane.f32.xlu0 %v177_v32 }
  0x19   : > { %184 = vadd.xlane.f32.xlu1 %v183_v33 }
  0x1c   : > { %190 = vadd.xlane.f32.xlu0 %v189_v36 }
  0x9d   : > { %v176_v37 = vpop.xlane.xlu0 %175 }
  0x9e   : > { %v192_v38 = vsub.f32 0.0, %v176_v37  ;;  %v182_v39 = vpop.xlane.xlu1 %181 }
  0x9f   : > { %v194_v40 = vsub.f32 0.0, %v182_v39 }
  0xa0   : > { %v197_v41 = vmul.f32 1.442695, %v192_v38 }
  0xa1   : > { %v201_v42 = vmul.f32 1.442695, %v194_v40  ;;  %v179_v43 = vpop.xlane.xlu0 %178 }
  0xa2   : > { %315 = vpow2.f32 %v197_v41  ;;  %v193_v44 = vsub.f32 0.0, %v179_v43  ;;  %v185_v45 = vpop.xlane.xlu1 %184 }
  0xa3   : > { %317 = vpow2.f32 %v201_v42  ;;  %v195_v46 = vsub.f32 0.0, %v185_v45 }
  0xa4   : > { %v199_v47 = vmul.f32 1.442695, %v193_v44 }
  0xa5   : > { %v203_v48 = vmul.f32 1.442695, %v195_v46  ;;  %v191_v49 = vpop.xlane.xlu0 %190 }
  0xa6   : > { %319 = vpow2.f32 %v199_v47  ;;  %v196_v50 = vsub.f32 0.0, %v191_v49 }
  0xa7   : > { %321 = vpow2.f32 %v203_v48 }
  0xa8   : > { %v205_v51 = vmul.f32 1.442695, %v196_v50 }
  0xaa   : > { %323 = vpow2.f32 %v205_v51 }
  0xaf   : > { %v316_v52 = vpop.eup %315 }
  0xb0   : > { %v318_v53 = vpop.eup %317  ;;  %v207_v54 = vadd.f32 1.0, %v316_v52 }
  0xb1   : > { %v209_v55 = vadd.f32 1.0, %v318_v53 }
  0xb2   : > { %325 = vrcp.f32 %v207_v54 }
  0xb3   : > { %v320_v56 = vpop.eup %319  ;;  %327 = vrcp.f32 %v209_v55 }
  0xb4   : > { %v322_v57 = vpop.eup %321  ;;  %v208_v58 = vadd.f32 1.0, %v320_v56 }
  0xb5   : > { %v210_v59 = vadd.f32 1.0, %v322_v57 }
  0xb6   : > { %329 = vrcp.f32 %v208_v58 }
  0xb7   : > { %v324_v60 = vpop.eup %323  ;;  %331 = vrcp.f32 %v210_v59 }
  0xb8   : > { %v211_v61 = vadd.f32 1.0, %v324_v60 }
  0xba   : > { %333 = vrcp.f32 %v211_v61 }
  0xbf   : > { %v326_v62 = vpop.eup %325 }
  0xc0   : > { %v328_v63 = vpop.eup %327  ;;  %v222_v0 = vmul.f32 %v326_v62, %v404_v10  ;;  %v223_v1 = vmul.f32 %v326_v62, %v406_v11 }
  0xc1   : > { %v226_v2 = vmul.f32 %v328_v63, %v408_v12  ;;  %v227_v3 = vmul.f32 %v328_v63, %v412_v15 }
  0xc2   : > { %232 = vst [vmem:[%s143_s11] sm:$0xff] %v222_v0  ;;  %233 = vst [vmem:[%s143_s11 + $0x8] sm:$0xff] %v223_v1 }
  0xc3   : > { %v330_v4 = vpop.eup %329  ;;  %236 = vst [vmem:[%s143_s11 + $0x20] sm:$0xff] %v226_v2  ;;  %237 = vst [vmem:[%s143_s11 + $0x28] sm:$0xff] %v227_v3 }
  0xc4   : > { %v332_v5 = vpop.eup %331  ;;  %v224_v6 = vmul.f32 %v330_v4, %v415_v17  ;;  %v225_v7 = vmul.f32 %v330_v4, %v417_v18 }
  0xc5   : > { %v228_v8 = vmul.f32 %v332_v5, %v422_v22  ;;  %v229_v9 = vmul.f32 %v332_v5, %v424_v23 }
  0xc6   : > { %234 = vst [vmem:[%s143_s11 + $0x10] sm:$0xff] %v224_v6  ;;  %235 = vst [vmem:[%s143_s11 + $0x18] sm:$0xff] %v225_v7 }
  0xc7   : > { %v334_v10 = vpop.eup %333  ;;  %238 = vst [vmem:[%s143_s11 + $0x30] sm:$0xff] %v228_v8  ;;  %239 = vst [vmem:[%s143_s11 + $0x38] sm:$0xff] %v229_v9 }
  0xc8   : > { %v230_v11 = vmul.f32 %v334_v10, %v426_v24  ;;  %v231_v12 = vmul.f32 %v334_v10, %v430_v28 }
  0xca   : > { %240 = vst [vmem:[%s143_s11 + $0x40] sm:$0x7] %v230_v11  ;;  %241 = vst [vmem:[%s143_s11 + $0x48] sm:$0x7] %v231_v12 }
  0xcb PF: > { %s12_s9 = sadd.s32 1, %s341_s9  }
  0xcc   : > { %p9_p4 = scmp.ge.s32.totalorder %s12_s9, 4  }
  0xce   :  { %11 = sbr.rel (!%p9_p4) target bundleno = 1 (0x1), region = 58 }

</bundles_post_ra>
